<compile_context>
chip_gen: v6e
topology: v6e:2x2x1
jax: 0.10.0
libtpu: 0.0.40
codegen_flags: <defaults>
</compile_context>

<pallas_src>
import numpy as np
import jax
import jax.numpy as jnp
from jax.experimental import pallas as pl
from jax.experimental.pallas import tpu as pltpu

# ---------------------------------------------------------------------------
# Static model geometry (CNN defaults).
# ---------------------------------------------------------------------------
IN_C, IN_H, IN_W = 1, 12, 10
CONV_K, CONV_S = 3, 1
POOL_K, POOL_S = 2, 1
CH = (IN_H - CONV_K) // CONV_S + 1            # 10  conv output H
CW = (IN_W - CONV_K) // CONV_S + 1            # 8   conv output W
PH = (CH - POOL_K) // POOL_S + 1              # 9   pooled output H
PW = (CW - POOL_K) // POOL_S + 1              # 7   pooled output W
NIN = IN_C * IN_H * IN_W                      # 120 flattened input features
NPOOL = PH * PW                               # 63  flattened pooled features
NCAND = POOL_K * POOL_K                       # 4   max-pool candidates
FPAD = 128                                    # padded feature width


def _round_up(n, m):
    return ((n + m - 1) // m) * m


# ---------------------------------------------------------------------------
# Kernel: operates on a (features=128, batch_tile=TB) slab, batch on lanes.
# ---------------------------------------------------------------------------
def cnn_kernel(x_ref, a_ref, wo_ref, bo_ref, o_ref):
    x = x_ref[...]                                                  # (128, TB) f32

    # Conv(+bias) for all 4 pool candidates in one MXU matmul.
    y = jnp.dot(a_ref[...], x, preferred_element_type=jnp.float32)  # (512, TB)

    # MaxPool2d(k=2, stride=1): elementwise max over the 4 candidate chunks.
    pooled = jnp.maximum(jnp.maximum(y[0:128, :], y[128:256, :]),
                         jnp.maximum(y[256:384, :], y[384:512, :]))  # (128, TB)

    # ConvBlock activation (ReLU).  Padded rows (>=63) are exactly zero.
    h = jnp.maximum(pooled, 0.0)

    # LinearBlock: Linear(63 -> 1) + ReLU.
    logits = jnp.dot(wo_ref[...], h,
                     preferred_element_type=jnp.float32) + bo_ref[...]  # (1, TB)
    z = jnp.maximum(logits, 0.0)

    # Sigmoid; reciprocal goes to the EUP approx path (exp already on EUP).
    o_ref[...] = pl.reciprocal(1.0 + jnp.exp(-z), approx=True)


# ---------------------------------------------------------------------------
# Parameter init (mirrors torch defaults: uniform +-1/sqrt(fan_in)).
# ---------------------------------------------------------------------------
def init_params(key):
    k1, k2, k3, k4 = jax.random.split(key, 4)
    bc = 1.0 / np.sqrt(IN_C * CONV_K * CONV_K)
    w_conv = jax.random.uniform(k1, (CONV_K, CONV_K), jnp.float32, -bc, bc)
    b_conv = jax.random.uniform(k2, (), jnp.float32, -bc, bc)
    bf = 1.0 / np.sqrt(NPOOL)
    w_fc = jax.random.uniform(k3, (NPOOL,), jnp.float32, -bf, bf)
    b_fc = jax.random.uniform(k4, (), jnp.float32, -bf, bf)
    return w_conv, b_conv, w_fc, b_fc


# ---------------------------------------------------------------------------
# Fold conv + maxpool-candidate gather into one (512, 128) resident matrix.
# ---------------------------------------------------------------------------
def build_kernel_operands(w_conv, b_conv, w_fc, b_fc):
    # basis[di, dj, c, q, k] = 1 iff flattened input feature k feeds conv tap
    # (di, dj) of max-pool candidate c of pooled output position q.
    basis = np.zeros((CONV_K, CONV_K, NCAND, NPOOL, NIN), np.float32)
    cand_offsets = [(ci, cj) for ci in range(POOL_K) for cj in range(POOL_K)]
    for pi in range(PH):
        for pj in range(PW):
            q = pi * PW + pj
            for c, (ci, cj) in enumerate(cand_offsets):
                oi, oj = pi + ci, pj + cj                 # conv output position
                for di in range(CONV_K):
                    for dj in range(CONV_K):
                        k = (oi + di) * IN_W + (oj + dj)  # flattened NCHW index
                        basis[di, dj, c, q, k] = 1.0
    basis = jnp.asarray(basis)

    A = jnp.einsum('ij,ijcqk->cqk', w_conv, basis)        # (4, 63, 120)

    a_stack = jnp.zeros((NCAND * FPAD, FPAD), jnp.float32)
    for c in range(NCAND):
        a_stack = a_stack.at[c * FPAD:c * FPAD + NPOOL, :NIN].set(A[c])
        # Conv bias enters through the constant-1 input row (row NIN).
        a_stack = a_stack.at[c * FPAD:c * FPAD + NPOOL, NIN].set(b_conv)

    wo = jnp.zeros((1, FPAD), jnp.float32).at[0, :NPOOL].set(w_fc)
    bo = jnp.reshape(b_fc, (1, 1))
    return a_stack, wo, bo


# ---------------------------------------------------------------------------
# Wrapper: layout plumbing + pallas_call with a parallel batch grid.
# ---------------------------------------------------------------------------
def cnn_forward(x_nchw, params, *, tile_b=1024):
    w_conv, b_conv, w_fc, b_fc = params
    B = x_nchw.shape[0]

    a_stack, wo, bo = build_kernel_operands(w_conv, b_conv, w_fc, b_fc)

    # Batch tile: multiple of 128 (lane width); 512-2048 amortizes grid-step
    # overhead for big B.  Budgeted well under scoped VMEM on v5e/v6e/v7x.
    TB = min(tile_b, _round_up(B, 128))
    Bp = _round_up(B, TB)
    grid = (Bp // TB,)

    # (B, 1, 12, 10) -> (B, 120) -> transpose to (features, batch), pad to
    # (128, Bp).  Row NIN is a constant 1 (carries the conv bias).
    x_flat = x_nchw.reshape(B, NIN).astype(jnp.float32)
    xt = jnp.zeros((FPAD, Bp), jnp.float32)
    xt = xt.at[:NIN, :B].set(x_flat.T)
    xt = xt.at[NIN, :].set(1.0)

    out = pl.pallas_call(
        cnn_kernel,
        out_shape=jax.ShapeDtypeStruct((1, Bp), jnp.float32),
        grid=grid,
        in_specs=[
            pl.BlockSpec((FPAD, TB), lambda i: (0, i)),          # x stream
            pl.BlockSpec((NCAND * FPAD, FPAD), lambda i: (0, 0)),  # folded conv+pool
            pl.BlockSpec((1, FPAD), lambda i: (0, 0)),           # fc weights
            pl.BlockSpec((1, 1), lambda i: (0, 0)),              # fc bias
        ],
        out_specs=pl.BlockSpec((1, TB), lambda i: (0, i)),       # lane-dense output
        compiler_params=pltpu.CompilerParams(
            dimension_semantics=("parallel",)),
    )(xt, a_stack, wo, bo)

    return out[0, :B]                                            # (B,)


# ---------------------------------------------------------------------------
# Pure-JAX reference (mirrors the PyTorch module exactly).
# ---------------------------------------------------------------------------
def cnn_reference(x_nchw, params):
    w_conv, b_conv, w_fc, b_fc = params
    B = x_nchw.shape[0]
    x = x_nchw.astype(jnp.float32)
    conv = jax.lax.conv_general_dilated(
        x, w_conv.reshape(1, 1, CONV_K, CONV_K),
        window_strides=(CONV_S, CONV_S), padding='VALID',
        dimension_numbers=('NCHW', 'OIHW', 'NCHW')) + b_conv
    pooled = jax.lax.reduce_window(
        conv, -jnp.inf, jax.lax.max,
        (1, 1, POOL_K, POOL_K), (1, 1, POOL_S, POOL_S), 'VALID')
    h = jnp.maximum(pooled, 0.0).reshape(B, NPOOL)
    logits = h @ w_fc.reshape(NPOOL, 1) + b_fc
    z = jnp.maximum(logits, 0.0)
    return jax.nn.sigmoid(z)[:, 0]


if __name__ == "__main__":
    key = jax.random.PRNGKey(0)
    kx, kp = jax.random.split(key)

    B = 2
    x = jax.random.normal(kx, (B, IN_C, IN_H, IN_W), dtype=jnp.float32)
    params = init_params(kp)

    y = cnn_forward(x, params)
    y = jax.block_until_ready(y)

    y_ref = cnn_reference(x, params)
    assert y.shape == (B,), y.shape
    # Tolerance covers the EUP approx-reciprocal in the sigmoid epilogue.
    assert jnp.allclose(y, y_ref, atol=2e-3, rtol=2e-3), (y, y_ref)

    print("KERNEL_OK")
</pallas_src>

<mosaic_0001>
module attributes {stable_mosaic.version = 11 : i64} {
  func.func @cnn_kernel(%arg0: i32, %arg1: memref<128x128xf32, #tpu.memory_space<vmem>>, %arg2: memref<512x128xf32, #tpu.memory_space<vmem>>, %arg3: memref<1x128xf32, #tpu.memory_space<vmem>>, %arg4: memref<1x1xf32, #tpu.memory_space<vmem>>, %arg5: memref<1x128xf32, #tpu.memory_space<vmem>>) attributes {dimension_semantics = [#tpu.dimension_semantics<parallel>], iteration_bounds = array<i64: 1>, scalar_prefetch = 0 : i64, scratch_operands = 0 : i64, tpu.core_type = #tpu.core_type<tc>, window_params = [{transform_indices = @transform_0, window_bounds = array<i64: 128, 128>}, {pipeline_mode = #tpu.pipeline_mode<synchronous>, transform_indices = @transform_1, window_bounds = array<i64: 512, 128>}, {pipeline_mode = #tpu.pipeline_mode<synchronous>, transform_indices = @transform_2, window_bounds = array<i64: 1, 128>}, {pipeline_mode = #tpu.pipeline_mode<synchronous>, transform_indices = @transform_3, window_bounds = array<i64: 1, 1>}, {transform_indices = @transform_4, window_bounds = array<i64: 1, 128>}]} {
    %c0 = arith.constant 0 : index
    %c0_0 = arith.constant 0 : index
    %0 = vector.load %arg1[%c0, %c0_0] : memref<128x128xf32, #tpu.memory_space<vmem>>, vector<128x128xf32>
    %c0_1 = arith.constant 0 : index
    %c0_2 = arith.constant 0 : index
    %1 = vector.load %arg2[%c0_1, %c0_2] : memref<512x128xf32, #tpu.memory_space<vmem>>, vector<512x128xf32>
    %cst = arith.constant dense<0.000000e+00> : vector<512x128xf32>
    %2 = tpu.matmul %1, %0, %cst {dimension_numbers = #tpu.dot_dimension_numbers<[1], [0], [0], [1], [0, 0, 1, 1], [], []>} : vector<512x128xf32>, vector<128x128xf32>, vector<512x128xf32> -> vector<512x128xf32>
    %3 = vector.extract_strided_slice %2 {offsets = [0, 0], sizes = [128, 128], strides = [1, 1]} : vector<512x128xf32> to vector<128x128xf32>
    %4 = vector.extract_strided_slice %2 {offsets = [128, 0], sizes = [128, 128], strides = [1, 1]} : vector<512x128xf32> to vector<128x128xf32>
    %5 = arith.maximumf %3, %4 : vector<128x128xf32>
    %6 = vector.extract_strided_slice %2 {offsets = [256, 0], sizes = [128, 128], strides = [1, 1]} : vector<512x128xf32> to vector<128x128xf32>
    %7 = vector.extract_strided_slice %2 {offsets = [384, 0], sizes = [128, 128], strides = [1, 1]} : vector<512x128xf32> to vector<128x128xf32>
    %8 = arith.maximumf %6, %7 : vector<128x128xf32>
    %9 = arith.maximumf %5, %8 : vector<128x128xf32>
    %cst_3 = arith.constant 0.000000e+00 : f32
    %10 = vector.broadcast %cst_3 : f32 to vector<128x128xf32>
    %11 = arith.maximumf %9, %10 : vector<128x128xf32>
    %c0_4 = arith.constant 0 : index
    %c0_5 = arith.constant 0 : index
    %12 = vector.load %arg3[%c0_4, %c0_5] : memref<1x128xf32, #tpu.memory_space<vmem>>, vector<1x128xf32>
    %cst_6 = arith.constant dense<0.000000e+00> : vector<1x128xf32>
    %13 = tpu.matmul %12, %11, %cst_6 {dimension_numbers = #tpu.dot_dimension_numbers<[1], [0], [0], [1], [0, 0, 1, 1], [], []>} : vector<1x128xf32>, vector<128x128xf32>, vector<1x128xf32> -> vector<1x128xf32>
    %c0_7 = arith.constant 0 : index
    %c0_8 = arith.constant 0 : index
    %14 = vector.load %arg4[%c0_7, %c0_8] : memref<1x1xf32, #tpu.memory_space<vmem>>, vector<1x1xf32>
    %15 = vector.broadcast %14 : vector<1x1xf32> to vector<1x128xf32>
    %16 = arith.addf %13, %15 : vector<1x128xf32>
    %cst_9 = arith.constant 0.000000e+00 : f32
    %17 = vector.broadcast %cst_9 : f32 to vector<1x128xf32>
    %18 = arith.maximumf %16, %17 : vector<1x128xf32>
    %cst_10 = arith.constant 0.000000e+00 : f32
    %19 = vector.broadcast %cst_10 : f32 to vector<1x128xf32>
    %20 = arith.subf %19, %18 : vector<1x128xf32>
    %21 = math.exp %20 : vector<1x128xf32>
    %cst_11 = arith.constant 1.000000e+00 : f32
    %22 = vector.broadcast %cst_11 : f32 to vector<1x128xf32>
    %23 = arith.addf %22, %21 : vector<1x128xf32>
    %24 = tpu.reciprocal %23 {approx = true} : vector<1x128xf32> -> vector<1x128xf32>
    %c0_12 = arith.constant 0 : index
    %c0_13 = arith.constant 0 : index
    %25 = vector.load %arg5[%c0_12, %c0_13] : memref<1x128xf32, #tpu.memory_space<vmem>>, vector<1x128xf32>
    tpu.vector_store %arg5[%c0_12, %c0_13], %24 {strides = array<i32>} : memref<1x128xf32, #tpu.memory_space<vmem>>, vector<1x128xf32>,
    return
  }
  func.func @transform_0(%arg0: i32) -> (i32, i32) {
    %c0_i32 = arith.constant 0 : i32
    %c0_i32_0 = arith.constant 0 : i32
    return %c0_i32, %arg0 : i32, i32
  }
  func.func @transform_1(%arg0: i32) -> (i32, i32) {
    %c0_i32 = arith.constant 0 : i32
    %c0_i32_0 = arith.constant 0 : i32
    %c0_i32_1 = arith.constant 0 : i32
    return %c0_i32, %c0_i32_0 : i32, i32
  }
  func.func @transform_2(%arg0: i32) -> (i32, i32) {
    %c0_i32 = arith.constant 0 : i32
    %c0_i32_0 = arith.constant 0 : i32
    %c0_i32_1 = arith.constant 0 : i32
    return %c0_i32, %c0_i32_0 : i32, i32
  }
  func.func @transform_3(%arg0: i32) -> (i32, i32) {
    %c0_i32 = arith.constant 0 : i32
    %c0_i32_0 = arith.constant 0 : i32
    %c0_i32_1 = arith.constant 0 : i32
    return %c0_i32, %c0_i32_0 : i32, i32
  }
  func.func @transform_4(%arg0: i32) -> (i32, i32) {
    %c0_i32 = arith.constant 0 : i32
    %c0_i32_0 = arith.constant 0 : i32
    return %c0_i32, %arg0 : i32, i32
  }
}

</mosaic_0001>

<bundles_post_ra>
// kernel: tpu_custom_call.1
= control target key start
LH: loop header
LB: loop body
LE: loop exit
PB: predicated region body
PF: predicated region fallthrough
CT: control target
= control target key end

     0   :  { %s1195_s0 = inlined_call_operand.hbm [shape: f32[128,128], index: 0, kind: input, shape index: {}]   ;;  %s1196_s1 = inlined_call_operand.hbm [shape: f32[512,128], index: 1, kind: input, shape index: {}]   ;;  %s1197_s2 = inlined_call_operand.vmem [shape: f32[1,128], index: 2, kind: input, shape index: {}]   ;;  %s1198_s3 = inlined_call_operand.<no memory space> [shape: f32[1,1], index: 3, kind: input, shape index: {}]   ;;  %s1199_s4 = inlined_call_operand.hbm [shape: f32[1,128], index: 4, kind: output, shape index: {}]  }
   0x1   :  { %v9_v0 = vstv %s1198_s3 }
   0x2   :  { %10 = vst [vmem:[#allocation2] sm:$0x1] %v9_v0 }
   0x3   :  { %11 = vsyncpa [#allocation4], 0 }
   0x4   :  { %12 = vsyncpa [#allocation7], 0 }
   0x5   :  { %13 = vsyncpa [#allocation5], 0  ;;  %s1052_s17 = smov [#allocation3]  }
   0x6   :  { %s19_s18 = sshll.u32 %s1052_s17, 4  ;;  %s20_s18 = int_to_ptr.vmem [resolvable:$true] %s19_s18 }
   0x7   :  { %s994_s19 = scalar_lea.vmem %s20_s18, 2048  ;;  %p999_p1 = scmp.lt.s32.totalorder %s20_s18, %s20_s18 }
   0x8   :  { %p995_p0 = scmp.ne.s32.totalorder %s20_s18, %s994_s19  ;;  %p1000_p2 = scmp.lt.s32.totalorder %s994_s19, %s994_s19 }
   0xa   :  { %p1001_p3 = por %p1000_p2, %p999_p1 }
   0xc   :  { %p1002_p4 = pnand %p1001_p3, %p995_p0 }
   0xe   :  { %1005 = shalt.err (!%p1002_p4)
}
   0xf   :  { %s1053_s20 = smov 128   ;;  %s1054_s21 = smov 8  }
  0x10   :  { %25 = dma.hbm_to_vmem [thread:$0]  %s1195_s0, 2048, %s20_s18, [#allocation4], %s1053_s20, %s1053_s20, %s1054_s21  }
  0x11   :  { %s1055_s3 = smov [#allocation6]  }
  0x12   :  { %s31_s24 = sshll.u32 %s1055_s3, 4  ;;  %s32_s24 = int_to_ptr.vmem [resolvable:$true] %s31_s24 }
  0x13   :  { %s1014_s25 = scalar_lea.vmem %s32_s24, 8192  ;;  %p1019_p6 = scmp.lt.s32.totalorder %s32_s24, %s32_s24 }
  0x14   :  { %p1015_p5 = scmp.ne.s32.totalorder %s32_s24, %s1014_s25  ;;  %p1020_p7 = scmp.lt.s32.totalorder %s1014_s25, %s1014_s25 }
  0x16   :  { %p1021_p8 = por %p1020_p7, %p1019_p6 }
  0x18   :  { %p1022_p9 = pnand %p1021_p8, %p1015_p5 }
  0x1a   :  { %1025 = shalt.err (!%p1022_p9)
}
  0x1b   :  { %37 = dma.hbm_to_vmem [thread:$0]  %s1196_s1, 8192, %s32_s24, [#allocation7], %s1053_s20, %s1053_s20, %s1054_s21  }
  0x1c   :  { %1046 = dma.done.wait [#allocation4], 2048  }
  0x1d   :  { %1047 = vsyncadd [#allocation4], 4294965248 }
  0x1e   :  { %1048 = dma.done.wait [#allocation7], 8192  }
  0x1f   :  { %1049 = vsyncadd [#allocation7], 4294959104  ;;  %v63_v1 = vld [vmem:[#allocation3 + $0x78] sm:$0xff]  ;;  %v62_v2 = vld [vmem:[#allocation3 + $0x70] sm:$0xff]  ;;  %vm1057_vm0 = vmmov 0  }
  0x20   :  { %778 = vmatprep.subr.mxu0 %v63_v1  ;;  %941 = vmatprep.subr.mxu1 %v63_v1  ;;  %v61_v3 = vld [vmem:[#allocation3 + $0x68] sm:$0xff]  ;;  %v60_v4 = vld [vmem:[#allocation3 + $0x60] sm:$0xff]  ;;  %v59_v5 = vld [vmem:[#allocation3 + $0x58] sm:$0xff] }
  0x21   :  { %779 = vmatpush3.msra.mxu0 %v63_v1  ;;  %957 = vmatpush3.msra.mxu1 %v63_v1  ;;  %v58_v6 = vld [vmem:[#allocation3 + $0x50] sm:$0xff]  ;;  %v57_v7 = vld [vmem:[#allocation3 + $0x48] sm:$0xff]  ;;  %v56_v8 = vld [vmem:[#allocation3 + $0x40] sm:$0xff] }
  0x22   :  { %780 = vmatprep.subr.mxu0 %v62_v2  ;;  %942 = vmatprep.subr.mxu1 %v62_v2  ;;  %v55_v9 = vld [vmem:[#allocation3 + $0x38] sm:$0xff]  ;;  %v54_v10 = vld [vmem:[#allocation3 + $0x30] sm:$0xff]  ;;  %v53_v11 = vld [vmem:[#allocation3 + $0x28] sm:$0xff] }
  0x23   :  { %781 = vmatpush3.msra.mxu0 %v62_v2  ;;  %958 = vmatpush3.msra.mxu1 %v62_v2  ;;  %v52_v12 = vld [vmem:[#allocation3 + $0x20] sm:$0xff]  ;;  %v51_v13 = vld [vmem:[#allocation3 + $0x18] sm:$0xff]  ;;  %v50_v14 = vld [vmem:[#allocation3 + $0x10] sm:$0xff] }
  0x24   :  { %782 = vmatprep.subr.mxu0 %v61_v3  ;;  %943 = vmatprep.subr.mxu1 %v61_v3  ;;  %v49_v15 = vld [vmem:[#allocation3 + $0x8] sm:$0xff]  ;;  %v48_v16 = vld [vmem:[#allocation3] sm:$0xff]  ;;  %v98_v18 = vld [vmem:[#allocation6 + $0x110] sm:$0xff] }
  0x25   :  { %783 = vmatpush3.msra.mxu0 %v61_v3  ;;  %959 = vmatpush3.msra.mxu1 %v61_v3  ;;  %v64_v17 = vld [vmem:[#allocation6] sm:$0xff]  ;;  %v65_v19 = vld [vmem:[#allocation6 + $0x8] sm:$0xff]  ;;  %v99_v20 = vld [vmem:[#allocation6 + $0x118] sm:$0xff] }
  0x26   :  { %784 = vmatprep.subr.mxu0 %v60_v4  ;;  %944 = vmatprep.subr.mxu1 %v60_v4  ;;  %v66_v21 = vld [vmem:[#allocation6 + $0x10] sm:$0xff]  ;;  %v100_v22 = vld [vmem:[#allocation6 + $0x120] sm:$0xff]  ;;  %v67_v23 = vld [vmem:[#allocation6 + $0x18] sm:$0xff] }
  0x27   :  { %785 = vmatpush3.msra.mxu0 %v60_v4  ;;  %960 = vmatpush3.msra.mxu1 %v60_v4  ;;  %v101_v24 = vld [vmem:[#allocation6 + $0x128] sm:$0xff]  ;;  %v68_v25 = vld [vmem:[#allocation6 + $0x20] sm:$0xff]  ;;  %v102_v26 = vld [vmem:[#allocation6 + $0x130] sm:$0xff] }
  0x28   :  { %786 = vmatprep.subr.mxu0 %v59_v5  ;;  %945 = vmatprep.subr.mxu1 %v59_v5  ;;  %v69_v27 = vld [vmem:[#allocation6 + $0x28] sm:$0xff]  ;;  %v103_v28 = vld [vmem:[#allocation6 + $0x138] sm:$0xff]  ;;  %v70_v29 = vld [vmem:[#allocation6 + $0x30] sm:$0xff] }
  0x29   :  { %787 = vmatpush3.msra.mxu0 %v59_v5  ;;  %961 = vmatpush3.msra.mxu1 %v59_v5  ;;  %v104_v30 = vld [vmem:[#allocation6 + $0x140] sm:$0xff]  ;;  %v71_v31 = vld [vmem:[#allocation6 + $0x38] sm:$0xff]  ;;  %v105_v32 = vld [vmem:[#allocation6 + $0x148] sm:$0xff] }
  0x2a   :  { %788 = vmatprep.subr.mxu0 %v58_v6  ;;  %946 = vmatprep.subr.mxu1 %v58_v6  ;;  %v72_v33 = vld [vmem:[#allocation6 + $0x40] sm:$0xff]  ;;  %v106_v34 = vld [vmem:[#allocation6 + $0x150] sm:$0xff]  ;;  %v73_v35 = vld [vmem:[#allocation6 + $0x48] sm:$0xff] }
  0x2b   :  { %789 = vmatpush3.msra.mxu0 %v58_v6  ;;  %962 = vmatpush3.msra.mxu1 %v58_v6  ;;  %v107_v36 = vld [vmem:[#allocation6 + $0x158] sm:$0xff]  ;;  %v74_v37 = vld [vmem:[#allocation6 + $0x50] sm:$0xff]  ;;  %v108_v38 = vld [vmem:[#allocation6 + $0x160] sm:$0xff] }
  0x2c   :  { %790 = vmatprep.subr.mxu0 %v57_v7  ;;  %947 = vmatprep.subr.mxu1 %v57_v7  ;;  %v75_v39 = vld [vmem:[#allocation6 + $0x58] sm:$0xff]  ;;  %v109_v40 = vld [vmem:[#allocation6 + $0x168] sm:$0xff]  ;;  %v76_v41 = vld [vmem:[#allocation6 + $0x60] sm:$0xff] }
  0x2d   :  { %791 = vmatpush3.msra.mxu0 %v57_v7  ;;  %963 = vmatpush3.msra.mxu1 %v57_v7  ;;  %v110_v42 = vld [vmem:[#allocation6 + $0x170] sm:$0xff]  ;;  %v77_v43 = vld [vmem:[#allocation6 + $0x68] sm:$0xff]  ;;  %v111_v44 = vld [vmem:[#allocation6 + $0x178] sm:$0xff] }
  0x2e   :  { %792 = vmatprep.subr.mxu0 %v56_v8  ;;  %948 = vmatprep.subr.mxu1 %v56_v8  ;;  %v78_v45 = vld [vmem:[#allocation6 + $0x70] sm:$0xff]  ;;  %v112_v46 = vld [vmem:[#allocation6 + $0x180] sm:$0xff]  ;;  %v79_v47 = vld [vmem:[#allocation6 + $0x78] sm:$0xff] }
  0x2f   :  { %793 = vmatpush3.msra.mxu0 %v56_v8  ;;  %964 = vmatpush3.msra.mxu1 %v56_v8  ;;  %v113_v48 = vld [vmem:[#allocation6 + $0x188] sm:$0xff]  ;;  %v80_v49 = vld [vmem:[#allocation6 + $0x80] sm:$0xff]  ;;  %v114_v50 = vld [vmem:[#allocation6 + $0x190] sm:$0xff] }
  0x30   :  { %794 = vmatprep.subr.mxu0 %v55_v9  ;;  %949 = vmatprep.subr.mxu1 %v55_v9  ;;  %v81_v51 = vld [vmem:[#allocation6 + $0x88] sm:$0xff]  ;;  %v115_v52 = vld [vmem:[#allocation6 + $0x198] sm:$0xff]  ;;  %v82_v53 = vld [vmem:[#allocation6 + $0x90] sm:$0xff] }
  0x31   :  { %795 = vmatpush3.msra.mxu0 %v55_v9  ;;  %965 = vmatpush3.msra.mxu1 %v55_v9  ;;  %v116_v54 = vld [vmem:[#allocation6 + $0x1a0] sm:$0xff]  ;;  %v83_v55 = vld [vmem:[#allocation6 + $0x98] sm:$0xff]  ;;  %v117_v56 = vld [vmem:[#allocation6 + $0x1a8] sm:$0xff] }
  0x32   :  { %796 = vmatprep.subr.mxu0 %v54_v10  ;;  %950 = vmatprep.subr.mxu1 %v54_v10  ;;  %v84_v57 = vld [vmem:[#allocation6 + $0xa0] sm:$0xff]  ;;  %v118_v58 = vld [vmem:[#allocation6 + $0x1b0] sm:$0xff]  ;;  %v85_v59 = vld [vmem:[#allocation6 + $0xa8] sm:$0xff] }
  0x33   :  { %797 = vmatpush3.msra.mxu0 %v54_v10  ;;  %966 = vmatpush3.msra.mxu1 %v54_v10  ;;  %v119_v60 = vld [vmem:[#allocation6 + $0x1b8] sm:$0xff]  ;;  %v86_v61 = vld [vmem:[#allocation6 + $0xb0] sm:$0xff]  ;;  %v120_v62 = vld [vmem:[#allocation6 + $0x1c0] sm:$0xff] }
  0x34   :  { %798 = vmatprep.subr.mxu0 %v53_v11  ;;  %951 = vmatprep.subr.mxu1 %v53_v11  ;;  %v87_v63 = vld [vmem:[#allocation6 + $0xb8] sm:$0xff]  ;;  %v121_v0 = vld [vmem:[#allocation6 + $0x1c8] sm:$0xff]  ;;  %v88_v1 = vld [vmem:[#allocation6 + $0xc0] sm:$0xff] }
  0x35   :  { %799 = vmatpush3.msra.mxu0 %v53_v11  ;;  %967 = vmatpush3.msra.mxu1 %v53_v11  ;;  %v122_v2 = vld [vmem:[#allocation6 + $0x1d0] sm:$0xff]  ;;  %v89_v3 = vld [vmem:[#allocation6 + $0xc8] sm:$0xff]  ;;  %v123_v4 = vld [vmem:[#allocation6 + $0x1d8] sm:$0xff] }
  0x36   :  { %800 = vmatprep.subr.mxu0 %v52_v12  ;;  %952 = vmatprep.subr.mxu1 %v52_v12  ;;  %v90_v5 = vld [vmem:[#allocation6 + $0xd0] sm:$0xff]  ;;  %v124_v6 = vld [vmem:[#allocation6 + $0x1e0] sm:$0xff]  ;;  %v91_v7 = vld [vmem:[#allocation6 + $0xd8] sm:$0xff] }
  0x37   :  { %801 = vmatpush3.msra.mxu0 %v52_v12  ;;  %968 = vmatpush3.msra.mxu1 %v52_v12  ;;  %v125_v8 = vld [vmem:[#allocation6 + $0x1e8] sm:$0xff]  ;;  %v92_v9 = vld [vmem:[#allocation6 + $0xe0] sm:$0xff]  ;;  %v126_v10 = vld [vmem:[#allocation6 + $0x1f0] sm:$0xff] }
  0x38   :  { %802 = vmatprep.subr.mxu0 %v51_v13  ;;  %953 = vmatprep.subr.mxu1 %v51_v13  ;;  %v93_v11 = vld [vmem:[#allocation6 + $0xe8] sm:$0xff]  ;;  %v127_v12 = vld [vmem:[#allocation6 + $0x1f8] sm:$0xff] }
  0x39   :  { %803 = vmatpush3.msra.mxu0 %v51_v13  ;;  %969 = vmatpush3.msra.mxu1 %v51_v13  ;;  %v94_v13 = vld [vmem:[#allocation6 + $0xf0] sm:$0xff] }
  0x3a   :  { %804 = vmatprep.subr.mxu0 %v50_v14  ;;  %954 = vmatprep.subr.mxu1 %v50_v14 }
  0x3b   :  { %805 = vmatpush3.msra.mxu0 %v50_v14  ;;  %970 = vmatpush3.msra.mxu1 %v50_v14  ;;  %v95_v14 = vld [vmem:[#allocation6 + $0xf8] sm:$0xff] }
  0x3c   :  { %806 = vmatprep.subr.mxu0 %v49_v15  ;;  %955 = vmatprep.subr.mxu1 %v49_v15 }
  0x3d   :  { %807 = vmatpush3.msra.mxu0 %v49_v15  ;;  %971 = vmatpush3.msra.mxu1 %v49_v15  ;;  %v96_v15 = vld [vmem:[#allocation6 + $0x100] sm:$0xff] }
  0x3e   :  { %808 = vmatprep.subr.mxu0 %v48_v16  ;;  %956 = vmatprep.subr.mxu1 %v48_v16 }
  0x3f   :  { %809 = vmatpush3.msra.mxu0 %v48_v16  ;;  %972 = vmatpush3.msra.mxu1 %v48_v16  ;;  %v97_v16 = vld [vmem:[#allocation6 + $0x108] sm:$0xff] }
  0x40   :  { %810 = vmatprep.mubr.f32.mxu0 %v64_v17  ;;  %861 = vmatprep.mubr.f32.mxu1 %v98_v18  ;;  %v1056_v17 = vmov 0.0   ;;  %v578_v18 = vld [vmem:[#allocation2] sm:$0x1] }
  0x41   :  { %811 = vmatmul.mubr.f32.vlgmr.msra.gmra.mxu0 %v65_v19  ;;  %862 = vmatmul.mubr.f32.vlgmr.msra.gmra.mxu1 %v99_v20  ;;  %v1058_v19 = vmov 0  }
  0x42   :  { %813 = vmatprep.mubr.f32.mxu0 %v66_v21  ;;  %864 = vmatprep.mubr.f32.mxu1 %v100_v22 }
  0x43   :  { %906 = vmatprep.subr.mxu1 %v1056_v17  ;;  %981 = vset.pattern.permute.xlu0 %v1058_v19 }
  0x44   :  { %581 = vperm.xlu0 %981, %v578_v18  }
  0x45   :  { %814 = vmatmul.mubr.f32.gmra.mxu0 %v67_v23  ;;  %865 = vmatmul.mubr.f32.gmra.mxu1 %v101_v24 }
  0x46   :  { %816 = vmatprep.mubr.f32.mxu0 %v68_v25  ;;  %867 = vmatprep.mubr.f32.mxu1 %v102_v26 }
  0x49   :  { %817 = vmatmul.mubr.f32.gmra.mxu0 %v69_v27  ;;  %868 = vmatmul.mubr.f32.gmra.mxu1 %v103_v28 }
  0x4a   :  { %819 = vmatprep.mubr.f32.mxu0 %v70_v29  ;;  %870 = vmatprep.mubr.f32.mxu1 %v104_v30 }
  0x4d   :  { %820 = vmatmul.mubr.f32.gmra.mxu0 %v71_v31  ;;  %871 = vmatmul.mubr.f32.gmra.mxu1 %v105_v32 }
  0x4e   :  { %822 = vmatprep.mubr.f32.mxu0 %v72_v33  ;;  %873 = vmatprep.mubr.f32.mxu1 %v106_v34 }
  0x51   :  { %823 = vmatmul.mubr.f32.gmra.mxu0 %v73_v35  ;;  %874 = vmatmul.mubr.f32.gmra.mxu1 %v107_v36 }
  0x52   :  { %825 = vmatprep.mubr.f32.mxu0 %v74_v37  ;;  %876 = vmatprep.mubr.f32.mxu1 %v108_v38 }
  0x55   :  { %826 = vmatmul.mubr.f32.gmra.mxu0 %v75_v39  ;;  %877 = vmatmul.mubr.f32.gmra.mxu1 %v109_v40 }
  0x56   :  { %828 = vmatprep.mubr.f32.mxu0 %v76_v41  ;;  %879 = vmatprep.mubr.f32.mxu1 %v110_v42 }
  0x59   :  { %829 = vmatmul.mubr.f32.gmra.mxu0 %v77_v43  ;;  %880 = vmatmul.mubr.f32.gmra.mxu1 %v111_v44 }
  0x5a   :  { %831 = vmatprep.mubr.f32.mxu0 %v78_v45  ;;  %882 = vmatprep.mubr.f32.mxu1 %v112_v46 }
  0x5d   :  { %832 = vmatmul.mubr.f32.gmra.mxu0 %v79_v47  ;;  %883 = vmatmul.mubr.f32.gmra.mxu1 %v113_v48 }
  0x5e   :  { %834 = vmatprep.mubr.f32.mxu0 %v80_v49  ;;  %885 = vmatprep.mubr.f32.mxu1 %v114_v50 }
  0x61   :  { %835 = vmatmul.mubr.f32.gmra.mxu0 %v81_v51  ;;  %886 = vmatmul.mubr.f32.gmra.mxu1 %v115_v52 }
  0x62   :  { %837 = vmatprep.mubr.f32.mxu0 %v82_v53  ;;  %888 = vmatprep.mubr.f32.mxu1 %v116_v54 }
  0x65   :  { %838 = vmatmul.mubr.f32.gmra.mxu0 %v83_v55  ;;  %889 = vmatmul.mubr.f32.gmra.mxu1 %v117_v56 }
  0x66   :  { %840 = vmatprep.mubr.f32.mxu0 %v84_v57  ;;  %891 = vmatprep.mubr.f32.mxu1 %v118_v58 }
  0x69   :  { %841 = vmatmul.mubr.f32.gmra.mxu0 %v85_v59  ;;  %892 = vmatmul.mubr.f32.gmra.mxu1 %v119_v60 }
  0x6a   :  { %843 = vmatprep.mubr.f32.mxu0 %v86_v61  ;;  %894 = vmatprep.mubr.f32.mxu1 %v120_v62 }
  0x6d   :  { %844 = vmatmul.mubr.f32.gmra.mxu0 %v87_v63  ;;  %895 = vmatmul.mubr.f32.gmra.mxu1 %v121_v0 }
  0x6e   :  { %846 = vmatprep.mubr.f32.mxu0 %v88_v1  ;;  %897 = vmatprep.mubr.f32.mxu1 %v122_v2 }
  0x71   :  { %847 = vmatmul.mubr.f32.gmra.mxu0 %v89_v3  ;;  %898 = vmatmul.mubr.f32.gmra.mxu1 %v123_v4 }
  0x72   :  { %849 = vmatprep.mubr.f32.mxu0 %v90_v5  ;;  %900 = vmatprep.mubr.f32.mxu1 %v124_v6 }
  0x75   :  { %850 = vmatmul.mubr.f32.gmra.mxu0 %v91_v7  ;;  %901 = vmatmul.mubr.f32.gmra.mxu1 %v125_v8 }
  0x76   :  { %852 = vmatprep.mubr.f32.mxu0 %v92_v9  ;;  %903 = vmatprep.mubr.f32.mxu1 %v126_v10 }
  0x79   :  { %853 = vmatmul.mubr.f32.gmra.mxu0 %v93_v11  ;;  %904 = vmatmul.mubr.f32.gmra.mxu1 %v127_v12 }
  0x7a   :  { %855 = vmatprep.mubr.f32.mxu0 %v94_v13  ;;  %938 = vmatprep.mubr.msk.f32.mxu1 %vm1057_vm0, %v1056_v17 }
  0x7d   :  { %856 = vmatmul.mubr.f32.gmra.mxu0 %v95_v14 }
  0x7e   :  { %858 = vmatprep.mubr.f32.mxu0 %v96_v15 }
  0x81   :  { %859 = vmatmul.mubr.f32.gmra.mxu0 %v97_v16 }
 0x101   :  { %v1096_v20 = vpop.f32.mrf.mxu0  ;;  %v863_v21 = vpop.f32.mrf.mxu1 }
 0x103   :  { %v1098_v22 = vpop.f32.mrf.mxu0  ;;  %v364_v23 = vpop.f32.mrf.mxu1 }
 0x105   :  { %v815_v24 = vpop.f32.mrf.mxu0  ;;  %v866_v25 = vpop.f32.mrf.mxu1 }
 0x107   :  { %v204_v26 = vpop.f32.mrf.mxu0  ;;  %v374_v27 = vpop.f32.mrf.mxu1 }
 0x109   :  { %v818_v28 = vpop.f32.mrf.mxu0  ;;  %v869_v29 = vpop.f32.mrf.mxu1 }
 0x10b   :  { %v214_v30 = vpop.f32.mrf.mxu0  ;;  %v384_v31 = vpop.f32.mrf.mxu1 }
 0x10d   :  { %v821_v32 = vpop.f32.mrf.mxu0  ;;  %v1100_v33 = vpop.f32.mrf.mxu1 }
 0x10f   :  { %v224_v34 = vpop.f32.mrf.mxu0  ;;  %v1102_v35 = vpop.f32.mrf.mxu1 }
 0x111   :  { %v1104_v36 = vpop.f32.mrf.mxu0  ;;  %v1106_v37 = vpop.f32.mrf.mxu1 }
 0x113   :  { %v1108_v38 = vpop.f32.mrf.mxu0  ;;  %v1110_v39 = vpop.f32.mrf.mxu1 }
 0x115   :  { %v1112_v40 = vpop.f32.mrf.mxu0  ;;  %v1114_v41 = vpop.f32.mrf.mxu1 }
 0x117   :  { %v1116_v42 = vpop.f32.mrf.mxu0  ;;  %v1118_v43 = vpop.f32.mrf.mxu1 }
 0x119   :  { %v1120_v44 = vpop.f32.mrf.mxu0  ;;  %v881_v45 = vpop.f32.mrf.mxu1 }
 0x11b   :  { %v1122_v46 = vpop.f32.mrf.mxu0  ;;  %v1124_v47 = vpop.f32.mrf.mxu1 }
 0x11d   :  { %v833_v48 = vpop.f32.mrf.mxu0  ;;  %v1126_v49 = vpop.f32.mrf.mxu1 }
 0x11f   :  { %v1128_v50 = vpop.f32.mrf.mxu0  ;;  %v1130_v51 = vpop.f32.mrf.mxu1 }
 0x121   :  { %v1132_v52 = vpop.f32.mrf.mxu0  ;;  %v887_v53 = vpop.f32.mrf.mxu1 }
 0x122   :  { %v532_v58 = vmax.f32 %v863_v21, %v887_v53 }
 0x123   :  { %v1134_v54 = vpop.f32.mrf.mxu0  ;;  %v444_v55 = vpop.f32.mrf.mxu1 }
 0x124   :  { %v531_v62 = vmax.f32 %v364_v23, %v444_v55 }
 0x125   :  { %v839_v56 = vpop.f32.mrf.mxu0  ;;  %v890_v57 = vpop.f32.mrf.mxu1 }
 0x126   :  { %v516_v59 = vmax.f32 %v815_v24, %v839_v56  ;;  %v534_v3 = vmax.f32 %v866_v25, %v890_v57 }
 0x127   :  { %v284_v60 = vpop.f32.mrf.mxu0  ;;  %v454_v61 = vpop.f32.mrf.mxu1 }
 0x128   :  { %v1136_v63 = vmax.f32 %v516_v59, %v532_v58  ;;  %v515_v0 = vmax.f32 %v204_v26, %v284_v60  ;;  %v533_v8 = vmax.f32 %v374_v27, %v454_v61 }
 0x129   :  { %v842_v1 = vpop.f32.mrf.mxu0  ;;  %v893_v2 = vpop.f32.mrf.mxu1 }
 0x12a   :  { %v1138_v4 = vmax.f32 %v515_v0, %v531_v62  ;;  %v518_v5 = vmax.f32 %v818_v28, %v842_v1  ;;  %v536_v13 = vmax.f32 %v869_v29, %v893_v2 }
 0x12b   :  { %v294_v6 = vpop.f32.mrf.mxu0  ;;  %v464_v7 = vpop.f32.mrf.mxu1 }
 0x12c   :  { %v1140_v9 = vmax.f32 %v518_v5, %v534_v3  ;;  %v517_v10 = vmax.f32 %v214_v30, %v294_v6  ;;  %v535_v19 = vmax.f32 %v384_v31, %v464_v7 }
 0x12d   :  { %v845_v11 = vpop.f32.mrf.mxu0  ;;  %v896_v12 = vpop.f32.mrf.mxu1 }
 0x12e   :  { %v1142_v14 = vmax.f32 %v517_v10, %v533_v8  ;;  %v520_v15 = vmax.f32 %v821_v32, %v845_v11 }
 0x12f   :  { %v304_v16 = vpop.f32.mrf.mxu0  ;;  %v474_v18 = vpop.f32.mrf.mxu1 }
 0x130   :  { %v1144_v21 = vmax.f32 %v520_v15, %v536_v13  ;;  %v519_v23 = vmax.f32 %v224_v34, %v304_v16  ;;  %v537_v13 = vmax.f32 %v1102_v35, %v474_v18 }
 0x131   :  { %v848_v24 = vpop.f32.mrf.mxu0  ;;  %v899_v25 = vpop.f32.mrf.mxu1 }
 0x132   :  { %v1146_v26 = vmax.f32 %v519_v23, %v535_v19  ;;  %v568_v35 = vmax.f32 %v1144_v21, 0.0  ;;  %v566_v23 = vmax.f32 %v1140_v9, 0.0  ;;  %v565_v21 = vmax.f32 %v1142_v14, 0.0 }
 0x133   :  { %v314_v27 = vpop.f32.mrf.mxu0  ;;  %v484_v28 = vpop.f32.mrf.mxu1  ;;  %v564_v9 = vmax.f32 %v1136_v63, 0.0 }
 0x134   :  { %v567_v18 = vmax.f32 %v1146_v26, 0.0  ;;  %v513_v26 = vmax.f32 %v1098_v22, %v1134_v54  ;;  %v577_v22 = vld [vmem:[%s1197_s2] sm:$0x1]  ;;  %s1059_s2 = smov [#allocation8]  }
 0x135   :  { %v851_v53 = vpop.f32.mrf.mxu0  ;;  %v902_v30 = vpop.f32.mrf.mxu1  ;;  %s671_s28 = sshll.u32 %s1059_s2, 4  ;;  %s672_s28 = int_to_ptr.vmem [resolvable:$true] %s671_s28 }
 0x136   :  { %v542_v34 = vmax.f32 %v1114_v41, %v902_v30  ;;  %v524_v5 = vmax.f32 %v1112_v40, %v851_v53  ;;  %s1026_s29 = scalar_lea.vmem %s672_s28, 16  ;;  %s1030_s30 = scalar_lea.vmem %s672_s28, 32 }
 0x137   :  { %v324_v55 = vpop.f32.mrf.mxu0  ;;  %v494_v56 = vpop.f32.mrf.mxu1  ;;  %p1027_p10 = scmp.ne.s32.totalorder %s672_s28, %s1026_s29  ;;  %p1031_p11 = scmp.lt.s32.totalorder %s672_s28, %s672_s28 }
 0x138   :  { %v541_v6 = vmax.f32 %v1118_v43, %v494_v56  ;;  %v538_v43 = vmax.f32 %v1100_v33, %v896_v12  ;;  %p1032_p12 = scmp.lt.s32.totalorder %s1030_s30, %s1026_s29 }
 0x139   :  { %v854_v29 = vpop.f32.mrf.mxu0  ;;  %v905_v57 = vpop.f32.mrf.mxu1 }
 0x13a   :  { %v526_v31 = vmax.f32 %v1120_v44, %v854_v29  ;;  %v544_v60 = vmax.f32 %v881_v45, %v905_v57  ;;  %v540_v44 = vmax.f32 %v1106_v37, %v899_v25  ;;  %v523_v45 = vmax.f32 %v1116_v42, %v324_v55  ;;  %p1033_p13 = por %p1032_p12, %p1031_p11 }
 0x13b   :  { %v334_v58 = vpop.f32.mrf.mxu0  ;;  %v504_v32 = vpop.f32.mrf.mxu1  ;;  %v521_v37 = vmax.f32 %v1108_v38, %v314_v27  ;;  %v514_v25 = vmax.f32 %v1096_v20, %v1132_v52  ;;  %v584_v52 = vlaneseq }
 0x13c   :  { %v525_v0 = vmax.f32 %v1122_v46, %v334_v58  ;;  %v543_v1 = vmax.f32 %v1124_v47, %v504_v32  ;;  %v558_v7 = vmax.f32 %v526_v31, %v542_v34  ;;  %v522_v46 = vmax.f32 %v1104_v36, %v848_v24  ;;  %p1034_p0 = pnand %p1033_p13, %p1027_p10 }
 0x13d   :  { %v857_v59 = vpop.f32.mrf.mxu0  ;;  %v539_v47 = vmax.f32 %v1110_v39, %v484_v28  ;;  %v553_v39 = vmax.f32 %v521_v37, %v537_v13  ;;  %v585_v54 = vshrl.u32 %v584_v52, 7 }
 0x13e   :  { %v528_v61 = vmax.f32 %v833_v48, %v857_v59  ;;  %v557_v41 = vmax.f32 %v525_v0, %v541_v6  ;;  %v574_v40 = vmax.f32 %v558_v7, 0.0  ;;  %v554_v15 = vmax.f32 %v522_v46, %v538_v43 }
 0x13f   :  { %v344_v62 = vpop.f32.mrf.mxu0  ;;  %v555_v11 = vmax.f32 %v523_v45, %v539_v47  ;;  %v569_v38 = vmax.f32 %v553_v39, 0.0  ;;  %v586_v63 = vsub.s32 0, %v585_v54 }
 0x140   :  { %v560_v2 = vmax.f32 %v528_v61, %v544_v60  ;;  %v527_v3 = vmax.f32 %v1128_v50, %v344_v62  ;;  %v556_v50 = vmax.f32 %v524_v5, %v540_v44  ;;  %v573_v42 = vmax.f32 %v557_v41, 0.0 }
 0x141   :  { %v571_v16 = vmax.f32 %v555_v11, 0.0  ;;  %v570_v33 = vmax.f32 %v554_v15, 0.0  ;;  %v860_v12 = vpop.f32.mrf.mxu0 }
 0x142   :  { %v576_v8 = vmax.f32 %v560_v2, 0.0  ;;  %v559_v10 = vmax.f32 %v527_v3, %v543_v1  ;;  %v572_v36 = vmax.f32 %v556_v50, 0.0  ;;  %v530_v24 = vmax.f32 %v860_v12, %v1126_v49 }
 0x143   :  { %v354_v19 = vpop.f32.mrf.mxu0  ;;  %v563_v49 = vmax.f32 %v1138_v4, 0.0  ;;  %v582_v4 = vpop.permute.xlu0 %581 }
 0x144   :  { %v575_v48 = vmax.f32 %v559_v10, 0.0  ;;  %907 = vmatpush3.msra.mxu1 %v576_v8  ;;  %v529_v27 = vmax.f32 %v354_v19, %v1130_v51  ;;  %v546_v28 = vmax.f32 %v514_v25, %v530_v24  ;;  %v587_v14 = vrot.slane %v582_v4, %v586_v63 }
 0x145   :  { %908 = vmatprep.subr.mxu1 %v1056_v17 }
 0x146   :  { %909 = vmatpush3.msra.mxu1 %v575_v48  ;;  %v545_v53 = vmax.f32 %v513_v26, %v529_v27  ;;  %v562_v20 = vmax.f32 %v546_v28, 0.0 }
 0x147   :  { %910 = vmatprep.subr.mxu1 %v1056_v17 }
 0x148   :  { %911 = vmatpush3.msra.mxu1 %v574_v40  ;;  %v561_v51 = vmax.f32 %v545_v53, 0.0 }
 0x149   :  { %912 = vmatprep.subr.mxu1 %v1056_v17 }
 0x14a   :  { %913 = vmatpush3.msra.mxu1 %v573_v42 }
 0x14b   :  { %914 = vmatprep.subr.mxu1 %v1056_v17 }
 0x14c   :  { %915 = vmatpush3.msra.mxu1 %v572_v36 }
 0x14d   :  { %916 = vmatprep.subr.mxu1 %v1056_v17 }
 0x14e   :  { %917 = vmatpush3.msra.mxu1 %v571_v16 }
 0x14f   :  { %918 = vmatprep.subr.mxu1 %v1056_v17 }
 0x150   :  { %919 = vmatpush3.msra.mxu1 %v570_v33 }
 0x151   :  { %920 = vmatprep.subr.mxu1 %v1056_v17 }
 0x152   :  { %921 = vmatpush3.msra.mxu1 %v569_v38 }
 0x153   :  { %922 = vmatprep.subr.mxu1 %v1056_v17 }
 0x154   :  { %923 = vmatpush3.msra.mxu1 %v568_v35 }
 0x155   :  { %924 = vmatprep.subr.mxu1 %v1056_v17 }
 0x156   :  { %925 = vmatpush3.msra.mxu1 %v567_v18 }
 0x157   :  { %926 = vmatprep.subr.mxu1 %v1056_v17 }
 0x158   :  { %927 = vmatpush3.msra.mxu1 %v566_v23 }
 0x159   :  { %928 = vmatprep.subr.mxu1 %v1056_v17 }
 0x15a   :  { %929 = vmatpush3.msra.mxu1 %v565_v21 }
 0x15b   :  { %930 = vmatprep.subr.mxu1 %v1056_v17 }
 0x15c   :  { %931 = vmatpush3.msra.mxu1 %v564_v9 }
 0x15d   :  { %932 = vmatprep.subr.mxu1 %v1056_v17 }
 0x15e   :  { %933 = vmatpush3.msra.mxu1 %v563_v49 }
 0x15f   :  { %934 = vmatprep.subr.mxu1 %v1056_v17 }
 0x160   :  { %935 = vmatpush3.msra.mxu1 %v562_v20 }
 0x161   :  { %936 = vmatprep.subr.mxu1 %v1056_v17 }
 0x162   :  { %937 = vmatpush3.msra.mxu1 %v561_v51 }
 0x163   :  { %939 = vmatmul.mubr.f32.vlgmr.msra.gmra.mxu1 %v577_v22 }
 0x223   :  { %v654_v30 = vpop.f32.mrf.mxu1 }
 0x224   :  { %v655_v55 = vadd.f32 %v654_v30, %v587_v14 }
 0x225   :  { %v940_v56 = vpop.f32.mrf.mxu1 }
 0x226   :  { %v658_v29 = vmax.f32 %v655_v55, 0.0 }
 0x228   :  { %v659_v57 = vsub.f32 0.0, %v658_v29 }
 0x22a   :  { %v660_v58 = vmul.f32 1.442695, %v659_v57 }
 0x22c   :  { %982 = vpow2.f32 %v660_v58 }
 0x239   :  { %v983_v32 = vpop.eup %982 }
 0x23a   :  { %v662_v59 = vadd.f32 1.0, %v983_v32 }
 0x23c   :  { %984 = vrcp.f32 %v662_v59 }
 0x249   :  { %v985_v17 = vpop.eup %984 }
 0x24a   :  { %664 = vst [vmem:[#allocation8] sm:$0x1] %v985_v17 }
 0x24b   :  { %1037 = shalt.err (!%p1034_p0)
}
 0x24c   :  { %674 = dma.vmem_to_hbm [thread:$0]  %s672_s28, 16, %s1199_s4, [#allocation5]  }
 0x24d   :  { %1050 = dma.done.wait [#allocation5], 16  }
 0x24e   :  { %1051 = vsyncadd [#allocation5], 4294967280 }
 0x24f   :  { %678 = vsyncpa [#allocation4], 1 }
 0x250   :  { %679 = vsyncpa [#allocation7], 1 }
 0x251   :  { %680 = vsyncpa [#allocation5], 1 }

</bundles_post_ra>
